<compile_context>
chip_gen: v7x
topology: tpu7x:2x2x1
jax: 0.10.0
libtpu: 0.0.40
codegen_flags: <defaults>
</compile_context>

<pallas_src>
import functools
import math

import jax
import jax.numpy as jnp
from jax.experimental import pallas as pl
from jax.experimental.pallas import tpu as pltpu


def _round_up(x, m):
    return (x + m - 1) // m * m


def _pad2(a, d0, d1):
    p0, p1 = d0 - a.shape[0], d1 - a.shape[1]
    if p0 == 0 and p1 == 0:
        return a
    return jnp.pad(a, ((0, p0), (0, p1)))


def _pick_tile(dim, max_tile, align):
    """Largest tile (multiple of `align`, <= max_tile) with small padding waste."""
    max_tile = max(align, max_tile - max_tile % align)
    full = _round_up(dim, align)
    if full <= max_tile:
        return full
    best_t, best_pad = align, _round_up(dim, align)
    t = max_tile
    while t >= align:
        padded = _round_up(dim, t)
        if padded <= dim * 1.05 + align:   # <=~5% waste: take the largest such tile
            return t
        if padded < best_pad:
            best_t, best_pad = t, padded
        t -= align
    return best_t


def _batch_linear_kernel(*refs, m, has_bias, homogeneous, use_cache):
    idx = 0
    if not homogeneous:
        est_ref = refs[idx]; idx += 1         # (bm, 1) int32 per-row estimator
    x_ref = refs[idx]; idx += 1               # (bm, tk)
    r_ref = refs[idx]; idx += 1               # (1,1,tk) fast / (m_pad, tk) general
    wt_ref = refs[idx]; idx += 1              # (tk, tn) pre-transposed weight
    s_ref = refs[idx]; idx += 1               # (1,1,tn) fast / (m_pad, tn) general
    if has_bias:
        b_ref = refs[idx]; idx += 1
    o_ref = refs[idx]; idx += 1               # (bm, tn)
    acc_ref = refs[idx]; idx += 1             # (bm, tn) f32 scratch
    xr_ref = refs[idx] if use_cache else None  # (n_k, bm, tk) scratch

    j = pl.program_id(1)
    k = pl.program_id(2)

    @pl.when(k == 0)
    def _init():
        acc_ref[...] = jnp.zeros_like(acc_ref)

    def select_rows(table, est):
        # Unrolled VPU masked select over the M ensemble rows (no MXU one-hot).
        rows = table[0][None, :]
        for mm in range(1, m):
            rows = jnp.where(est == mm, table[mm][None, :], rows)
        return rows

    def compute_xr():
        x = x_ref[...]
        if homogeneous:
            return x * r_ref[0]                # (1, tk) broadcast over the tile rows
        return x * select_rows(r_ref[...], est_ref[...])

    if use_cache:
        # (x * r) for this (row tile, k) is independent of j: fill the cache at
        # j == 0 and reuse it for every output-column tile.
        @pl.when(j == 0)
        def _fill():
            xr_ref[k] = compute_xr()
        xr = xr_ref[k]
    else:
        xr = compute_xr()

    acc_ref[...] += jnp.dot(xr, wt_ref[...], preferred_element_type=jnp.float32)

    @pl.when(k == pl.num_programs(2) - 1)
    def _epilogue():
        acc = acc_ref[...]
        if homogeneous:
            y = acc * s_ref[0]
            if has_bias:
                y = y + b_ref[0]
        else:
            est = est_ref[...]
            y = acc * select_rows(s_ref[...], est)
            if has_bias:
                y = y + select_rows(b_ref[...], est)
        o_ref[...] = y.astype(o_ref.dtype)


def batch_linear_forward(x, weight, r_group, s_group, bias, num_estimators, *,
                         block_m=512, block_n=512, block_k=1024,
                         xr_cache_budget_bytes=12 * 1024 * 1024):
    """BatchEnsemble linear forward.

    x:        (N, H_in)
    weight:   (H_out, H_in)   shared weight (PyTorch layout)
    r_group:  (M, H_in)
    s_group:  (M, H_out)
    bias:     (M, H_out) or None
    returns:  (N, H_out)
    """
    n, h_in = x.shape
    h_out = weight.shape[0]
    m = int(num_estimators)
    assert m >= 1 and n >= m, "batch_size must be >= num_estimators"
    b = n // m
    extra = n % m

    dtype = x.dtype
    itemsize = jnp.dtype(dtype).itemsize
    row_align = {1: 32, 2: 16, 4: 8}.get(itemsize, 8)

    tn = _pick_tile(h_out, block_n, 128)
    tk = _pick_tile(h_in, block_k, 128)
    h_out_pad = _round_up(h_out, tn)
    h_in_pad = _round_up(h_in, tk)

    # Fast path: pick a row tile that divides b (examples per estimator) so
    # every row tile belongs to exactly one estimator.
    bm_h = 0
    if extra == 0 and b % row_align == 0:
        if b <= block_m:
            bm_h = b
        else:
            t = block_m - block_m % row_align
            while t >= row_align:
                if b % t == 0:
                    bm_h = t
                    break
                t -= row_align
    homogeneous = (bm_h == b and bm_h > 0) or bm_h >= 128
    bm = bm_h if homogeneous else _pick_tile(n, block_m, row_align)
    n_pad = _round_up(n, bm)
    n_i, n_j, n_k = n_pad // bm, h_out_pad // tn, h_in_pad // tk

    has_bias = bias is not None

    # Cast parameters to the activation dtype (keeps the MXU on its fast path,
    # halves weight HBM traffic for 16-bit activations).
    x_p = _pad2(x, n_pad, h_in_pad)
    wt_p = _pad2(weight.T.astype(dtype), h_in_pad, h_out_pad)   # (H_in, H_out)
    r_c = r_group.astype(dtype)
    s_c = s_group.astype(dtype)
    b_c = bias.astype(dtype) if has_bias else None

    inputs, in_specs = [], []
    use_cache = False
    if homogeneous:
        eb = b // bm                     # row tiles per estimator
        r_p = _pad2(r_c, m, h_in_pad).reshape(m, 1, h_in_pad)
        s_p = _pad2(s_c, m, h_out_pad).reshape(m, 1, h_out_pad)
        inputs += [x_p, r_p, wt_p, s_p]
        in_specs += [
            pl.BlockSpec((bm, tk), lambda i, j, k: (i, k)),
            pl.BlockSpec((1, 1, tk), lambda i, j, k: (i // eb, 0, k)),
            pl.BlockSpec((tk, tn), lambda i, j, k: (k, j)),
            pl.BlockSpec((1, 1, tn), lambda i, j, k: (i // eb, 0, j)),
        ]
        if has_bias:
            inputs.append(_pad2(b_c, m, h_out_pad).reshape(m, 1, h_out_pad))
            in_specs.append(pl.BlockSpec((1, 1, tn), lambda i, j, k: (i // eb, 0, j)))
    else:
        m_pad = _round_up(m, 8)
        # Per-row estimator index, matching the module's blocked repeat
        # 'm h -> (m b) h' + cat(expanded[:extra]).  Padded rows (>= n) clamp
        # to a valid estimator; they are sliced off, so never consumed.
        rows = jnp.arange(n_pad, dtype=jnp.int32)
        est = jnp.where(rows < m * b, rows // b, (rows - m * b) // b)
        est = jnp.minimum(est, m - 1).reshape(n_pad, 1)
        r_p = _pad2(r_c, m_pad, h_in_pad)
        s_p = _pad2(s_c, m_pad, h_out_pad)
        inputs += [est, x_p, r_p, wt_p, s_p]
        in_specs += [
            pl.BlockSpec((bm, 1), lambda i, j, k: (i, 0)),
            pl.BlockSpec((bm, tk), lambda i, j, k: (i, k)),
            pl.BlockSpec((m_pad, tk), lambda i, j, k: (0, k)),
            pl.BlockSpec((tk, tn), lambda i, j, k: (k, j)),
            pl.BlockSpec((m_pad, tn), lambda i, j, k: (0, j)),
        ]
        if has_bias:
            inputs.append(_pad2(b_c, m_pad, h_out_pad))
            in_specs.append(pl.BlockSpec((m_pad, tn), lambda i, j, k: (0, j)))
        cache_bytes = n_k * bm * tk * itemsize
        use_cache = n_j > 1 and cache_bytes <= xr_cache_budget_bytes

    scratch_shapes = [pltpu.VMEM((bm, tn), jnp.float32)]
    if use_cache:
        scratch_shapes.append(pltpu.VMEM((n_k, bm, tk), dtype))

    kernel = functools.partial(_batch_linear_kernel, m=m, has_bias=has_bias,
                               homogeneous=homogeneous, use_cache=use_cache)

    # The xr cache introduces a j==0 -> j>0 dependence, so j must stay on one
    # core and run in order when the cache is enabled.
    dims = ("parallel", "arbitrary" if use_cache else "parallel", "arbitrary")

    # VMEM budget: double-buffered in/out blocks + f32 accumulator + xr cache.
    prow = 1 if homogeneous else _round_up(m, 8)
    blk = (bm * tk + tk * tn + bm * tn) * itemsize
    blk += prow * (tk + 2 * tn) * itemsize
    if not homogeneous:
        blk += bm * 4
    vmem_est = 2 * blk + bm * tn * 4
    if use_cache:
        vmem_est += n_k * bm * tk * itemsize
    vmem_limit = int(min(48 * 1024 * 1024, max(32 * 1024 * 1024, 2 * vmem_est)))

    out = pl.pallas_call(
        kernel,
        out_shape=jax.ShapeDtypeStruct((n_pad, h_out_pad), dtype),
        grid_spec=pltpu.PrefetchScalarGridSpec(
            num_scalar_prefetch=0,
            grid=(n_i, n_j, n_k),
            in_specs=in_specs,
            out_specs=pl.BlockSpec((bm, tn), lambda i, j, k: (i, j)),
            scratch_shapes=scratch_shapes,
        ),
        compiler_params=pltpu.CompilerParams(
            dimension_semantics=dims,
            vmem_limit_bytes=vmem_limit,
        ),
    )(*inputs)

    return out[:n, :h_out]


def init_params(key, in_features, out_features, num_estimators, dtype=jnp.float32):
    """Deterministic parameter init mirroring BatchLinear.reset_parameters()."""
    k_w, k_r, k_s, k_b = jax.random.split(key, 4)
    bound = 1.0 / math.sqrt(in_features)
    weight = jax.random.uniform(k_w, (out_features, in_features), dtype, -bound, bound)
    r_group = 1.0 + 0.5 * jax.random.normal(k_r, (num_estimators, in_features), dtype)
    s_group = 1.0 + 0.5 * jax.random.normal(k_s, (num_estimators, out_features), dtype)
    bias = jax.random.uniform(k_b, (num_estimators, out_features), dtype, -bound, bound)
    return weight, r_group, s_group, bias


def _reference(x, weight, r_group, s_group, bias, m):
    # Plain-JAX reference with the same blocked repeat + cat-extra expansion.
    n = x.shape[0]
    b = n // m
    rows = jnp.arange(n)
    est = jnp.where(rows < m * b, rows // b, (rows - m * b) // b)
    y = jnp.matmul(x * r_group[est], weight.T, precision=jax.lax.Precision.HIGHEST)
    y = y * s_group[est]
    if bias is not None:
        y = y + bias[est]
    return y


if __name__ == "__main__":
    key = jax.random.PRNGKey(0)

    def check(n, h_in, h_out, m, with_bias, k):
        kx, kp = jax.random.split(k)
        x = jax.random.normal(kx, (n, h_in), jnp.float32)
        weight, r_group, s_group, bias = init_params(kp, h_in, h_out, m)
        bias = bias if with_bias else None
        out = jax.block_until_ready(
            batch_linear_forward(x, weight, r_group, s_group, bias, m))
        ref = _reference(x, weight, r_group, s_group, bias, m)
        assert out.shape == (n, h_out)
        assert jnp.allclose(out, ref, atol=2e-3, rtol=2e-3), (n, h_in, h_out, m, with_bias)

    keys = jax.random.split(key, 4)
    # 1) General path (2 rows/estimator -> mixed-estimator row tile), with bias.
    check(8, 32, 64, 4, True, keys[0])
    # 2) General path, no bias.
    check(8, 32, 64, 4, False, keys[1])
    # 3) Homogeneous fast path (row tile == examples per estimator).
    check(64, 32, 64, 4, True, keys[2])
    # 4) General path + xr cache (two output-column tiles) + extra rows (8 % 3 != 0).
    check(8, 256, 1024, 3, True, keys[3])

    print("KERNEL_OK")
</pallas_src>

<mosaic_0001>
module attributes {stable_mosaic.version = 11 : i64} {
  func.func @_batch_linear_kernel(%arg0: i32, %arg1: i32, %arg2: i32, %arg3: memref<8x1xi32, #tpu.memory_space<vmem>>, %arg4: memref<8x128xf32, #tpu.memory_space<vmem>>, %arg5: memref<8x128xf32, #tpu.memory_space<vmem>>, %arg6: memref<128x128xf32, #tpu.memory_space<vmem>>, %arg7: memref<8x128xf32, #tpu.memory_space<vmem>>, %arg8: memref<8x128xf32, #tpu.memory_space<vmem>>, %arg9: memref<8x128xf32, #tpu.memory_space<vmem>>, %arg10: memref<8x128xf32, #tpu.memory_space<vmem>>) attributes {dimension_semantics = [#tpu.dimension_semantics<parallel>, #tpu.dimension_semantics<parallel>, #tpu.dimension_semantics<arbitrary>], iteration_bounds = array<i64: 1, 1, 1>, scalar_prefetch = 0 : i64, scratch_operands = 1 : i64, tpu.core_type = #tpu.core_type<tc>, window_params = [{transform_indices = @transform_0, window_bounds = array<i64: 8, 1>}, {transform_indices = @transform_1, window_bounds = array<i64: 8, 128>}, {transform_indices = @transform_2, window_bounds = array<i64: 8, 128>}, {transform_indices = @transform_3, window_bounds = array<i64: 128, 128>}, {transform_indices = @transform_4, window_bounds = array<i64: 8, 128>}, {transform_indices = @transform_5, window_bounds = array<i64: 8, 128>}, {transform_indices = @transform_6, window_bounds = array<i64: 8, 128>}]} {
    %c0_i32 = arith.constant 0 : i32
    %0 = arith.cmpi eq, %arg2, %c0_i32 : i32
    %1 = arith.extui %0 : i1 to i32
    %c0_i32_0 = arith.constant 0 : i32
    %2 = arith.cmpi ne, %1, %c0_i32_0 : i32
    scf.if %2 {
      %cst_14 = arith.constant 0.000000e+00 : f32
      %50 = vector.broadcast %cst_14 : f32 to vector<8x128xf32>
      %c0_15 = arith.constant 0 : index
      %c0_16 = arith.constant 0 : index
      %51 = vector.load %arg10[%c0_15, %c0_16] : memref<8x128xf32, #tpu.memory_space<vmem>>, vector<8x128xf32>
      tpu.vector_store %arg10[%c0_15, %c0_16], %50 {strides = array<i32>} : memref<8x128xf32, #tpu.memory_space<vmem>>, vector<8x128xf32>,
    } else {
    }
    %c0 = arith.constant 0 : index
    %c0_1 = arith.constant 0 : index
    %3 = vector.load %arg4[%c0, %c0_1] : memref<8x128xf32, #tpu.memory_space<vmem>>, vector<8x128xf32>
    %c0_2 = arith.constant 0 : index
    %c0_3 = arith.constant 0 : index
    %4 = vector.load %arg5[%c0_2, %c0_3] : memref<8x128xf32, #tpu.memory_space<vmem>>, vector<8x128xf32>
    %c0_4 = arith.constant 0 : index
    %c0_5 = arith.constant 0 : index
    %5 = vector.load %arg3[%c0_4, %c0_5] : memref<8x1xi32, #tpu.memory_space<vmem>>, vector<8x1xi32>
    %6 = vector.extract_strided_slice %4 {offsets = [0, 0], sizes = [1, 128], strides = [1, 1]} : vector<8x128xf32> to vector<1x128xf32>
    %7 = vector.shape_cast %6 : vector<1x128xf32> to vector<128xf32>
    %8 = vector.shape_cast %7 : vector<128xf32> to vector<1x128xf32>
    %c1_i32 = arith.constant 1 : i32
    %9 = vector.broadcast %c1_i32 : i32 to vector<8x1xi32>
    %10 = arith.cmpi eq, %5, %9 : vector<8x1xi32>
    %11 = vector.extract_strided_slice %4 {offsets = [1, 0], sizes = [1, 128], strides = [1, 1]} : vector<8x128xf32> to vector<1x128xf32>
    %12 = vector.shape_cast %11 : vector<1x128xf32> to vector<128xf32>
    %13 = vector.shape_cast %12 : vector<128xf32> to vector<1x128xf32>
    %14 = vector.shape_cast %10 : vector<8x1xi1> to vector<8x1xi1>
    %15 = vector.broadcast %14 : vector<8x1xi1> to vector<8x128xi1>
    %16 = vector.shape_cast %13 : vector<1x128xf32> to vector<1x128xf32>
    %17 = vector.broadcast %16 : vector<1x128xf32> to vector<8x128xf32>
    %18 = vector.shape_cast %8 : vector<1x128xf32> to vector<1x128xf32>
    %19 = vector.broadcast %18 : vector<1x128xf32> to vector<8x128xf32>
    %20 = arith.select %15, %17, %19 : vector<8x128xi1>, vector<8x128xf32>
    %c2_i32 = arith.constant 2 : i32
    %21 = vector.broadcast %c2_i32 : i32 to vector<8x1xi32>
    %22 = arith.cmpi eq, %5, %21 : vector<8x1xi32>
    %23 = vector.extract_strided_slice %4 {offsets = [2, 0], sizes = [1, 128], strides = [1, 1]} : vector<8x128xf32> to vector<1x128xf32>
    %24 = vector.shape_cast %23 : vector<1x128xf32> to vector<128xf32>
    %25 = vector.shape_cast %24 : vector<128xf32> to vector<1x128xf32>
    %26 = vector.shape_cast %22 : vector<8x1xi1> to vector<8x1xi1>
    %27 = vector.broadcast %26 : vector<8x1xi1> to vector<8x128xi1>
    %28 = vector.shape_cast %25 : vector<1x128xf32> to vector<1x128xf32>
    %29 = vector.broadcast %28 : vector<1x128xf32> to vector<8x128xf32>
    %30 = arith.select %27, %29, %20 : vector<8x128xi1>, vector<8x128xf32>
    %c3_i32 = arith.constant 3 : i32
    %31 = vector.broadcast %c3_i32 : i32 to vector<8x1xi32>
    %32 = arith.cmpi eq, %5, %31 : vector<8x1xi32>
    %33 = vector.extract_strided_slice %4 {offsets = [3, 0], sizes = [1, 128], strides = [1, 1]} : vector<8x128xf32> to vector<1x128xf32>
    %34 = vector.shape_cast %33 : vector<1x128xf32> to vector<128xf32>
    %35 = vector.shape_cast %34 : vector<128xf32> to vector<1x128xf32>
    %36 = vector.shape_cast %32 : vector<8x1xi1> to vector<8x1xi1>
    %37 = vector.broadcast %36 : vector<8x1xi1> to vector<8x128xi1>
    %38 = vector.shape_cast %35 : vector<1x128xf32> to vector<1x128xf32>
    %39 = vector.broadcast %38 : vector<1x128xf32> to vector<8x128xf32>
    %40 = arith.select %37, %39, %30 : vector<8x128xi1>, vector<8x128xf32>
    %41 = arith.mulf %3, %40 : vector<8x128xf32>
    %c0_6 = arith.constant 0 : index
    %c0_7 = arith.constant 0 : index
    %42 = vector.load %arg10[%c0_6, %c0_7] : memref<8x128xf32, #tpu.memory_space<vmem>>, vector<8x128xf32>
    %c0_8 = arith.constant 0 : index
    %c0_9 = arith.constant 0 : index
    %43 = vector.load %arg6[%c0_8, %c0_9] : memref<128x128xf32, #tpu.memory_space<vmem>>, vector<128x128xf32>
    %cst = arith.constant dense<0.000000e+00> : vector<8x128xf32>
    %44 = tpu.matmul %41, %43, %cst {dimension_numbers = #tpu.dot_dimension_numbers<[1], [0], [0], [1], [0, 0, 1, 1], [], []>} : vector<8x128xf32>, vector<128x128xf32>, vector<8x128xf32> -> vector<8x128xf32>
    %45 = arith.addf %42, %44 : vector<8x128xf32>
    %c0_10 = arith.constant 0 : index
    %c0_11 = arith.constant 0 : index
    %46 = vector.load %arg10[%c0_10, %c0_11] : memref<8x128xf32, #tpu.memory_space<vmem>>, vector<8x128xf32>
    tpu.vector_store %arg10[%c0_10, %c0_11], %45 {strides = array<i32>} : memref<8x128xf32, #tpu.memory_space<vmem>>, vector<8x128xf32>,
    %c0_i32_12 = arith.constant 0 : i32
    %47 = arith.cmpi eq, %arg2, %c0_i32_12 : i32
    %48 = arith.extui %47 : i1 to i32
    %c0_i32_13 = arith.constant 0 : i32
    %49 = arith.cmpi ne, %48, %c0_i32_13 : i32
    scf.if %49 {
      %c0_14 = arith.constant 0 : index
      %c0_15 = arith.constant 0 : index
      %50 = vector.load %arg10[%c0_14, %c0_15] : memref<8x128xf32, #tpu.memory_space<vmem>>, vector<8x128xf32>
      %c0_16 = arith.constant 0 : index
      %c0_17 = arith.constant 0 : index
      %51 = vector.load %arg3[%c0_16, %c0_17] : memref<8x1xi32, #tpu.memory_space<vmem>>, vector<8x1xi32>
      %c0_18 = arith.constant 0 : index
      %c0_19 = arith.constant 0 : index
      %52 = vector.load %arg7[%c0_18, %c0_19] : memref<8x128xf32, #tpu.memory_space<vmem>>, vector<8x128xf32>
      %53 = vector.extract_strided_slice %52 {offsets = [0, 0], sizes = [1, 128], strides = [1, 1]} : vector<8x128xf32> to vector<1x128xf32>
      %54 = vector.shape_cast %53 : vector<1x128xf32> to vector<128xf32>
      %55 = vector.shape_cast %54 : vector<128xf32> to vector<1x128xf32>
      %c1_i32_20 = arith.constant 1 : i32
      %56 = vector.broadcast %c1_i32_20 : i32 to vector<8x1xi32>
      %57 = arith.cmpi eq, %51, %56 : vector<8x1xi32>
      %58 = vector.extract_strided_slice %52 {offsets = [1, 0], sizes = [1, 128], strides = [1, 1]} : vector<8x128xf32> to vector<1x128xf32>
      %59 = vector.shape_cast %58 : vector<1x128xf32> to vector<128xf32>
      %60 = vector.shape_cast %59 : vector<128xf32> to vector<1x128xf32>
      %61 = vector.shape_cast %57 : vector<8x1xi1> to vector<8x1xi1>
      %62 = vector.broadcast %61 : vector<8x1xi1> to vector<8x128xi1>
      %63 = vector.shape_cast %60 : vector<1x128xf32> to vector<1x128xf32>
      %64 = vector.broadcast %63 : vector<1x128xf32> to vector<8x128xf32>
      %65 = vector.shape_cast %55 : vector<1x128xf32> to vector<1x128xf32>
      %66 = vector.broadcast %65 : vector<1x128xf32> to vector<8x128xf32>
      %67 = arith.select %62, %64, %66 : vector<8x128xi1>, vector<8x128xf32>
      %c2_i32_21 = arith.constant 2 : i32
      %68 = vector.broadcast %c2_i32_21 : i32 to vector<8x1xi32>
      %69 = arith.cmpi eq, %51, %68 : vector<8x1xi32>
      %70 = vector.extract_strided_slice %52 {offsets = [2, 0], sizes = [1, 128], strides = [1, 1]} : vector<8x128xf32> to vector<1x128xf32>
      %71 = vector.shape_cast %70 : vector<1x128xf32> to vector<128xf32>
      %72 = vector.shape_cast %71 : vector<128xf32> to vector<1x128xf32>
      %73 = vector.shape_cast %69 : vector<8x1xi1> to vector<8x1xi1>
      %74 = vector.broadcast %73 : vector<8x1xi1> to vector<8x128xi1>
      %75 = vector.shape_cast %72 : vector<1x128xf32> to vector<1x128xf32>
      %76 = vector.broadcast %75 : vector<1x128xf32> to vector<8x128xf32>
      %77 = arith.select %74, %76, %67 : vector<8x128xi1>, vector<8x128xf32>
      %c3_i32_22 = arith.constant 3 : i32
      %78 = vector.broadcast %c3_i32_22 : i32 to vector<8x1xi32>
      %79 = arith.cmpi eq, %51, %78 : vector<8x1xi32>
      %80 = vector.extract_strided_slice %52 {offsets = [3, 0], sizes = [1, 128], strides = [1, 1]} : vector<8x128xf32> to vector<1x128xf32>
      %81 = vector.shape_cast %80 : vector<1x128xf32> to vector<128xf32>
      %82 = vector.shape_cast %81 : vector<128xf32> to vector<1x128xf32>
      %83 = vector.shape_cast %79 : vector<8x1xi1> to vector<8x1xi1>
      %84 = vector.broadcast %83 : vector<8x1xi1> to vector<8x128xi1>
      %85 = vector.shape_cast %82 : vector<1x128xf32> to vector<1x128xf32>
      %86 = vector.broadcast %85 : vector<1x128xf32> to vector<8x128xf32>
      %87 = arith.select %84, %86, %77 : vector<8x128xi1>, vector<8x128xf32>
      %88 = arith.mulf %50, %87 : vector<8x128xf32>
      %c0_23 = arith.constant 0 : index
      %c0_24 = arith.constant 0 : index
      %89 = vector.load %arg8[%c0_23, %c0_24] : memref<8x128xf32, #tpu.memory_space<vmem>>, vector<8x128xf32>
      %90 = vector.extract_strided_slice %89 {offsets = [0, 0], sizes = [1, 128], strides = [1, 1]} : vector<8x128xf32> to vector<1x128xf32>
      %91 = vector.shape_cast %90 : vector<1x128xf32> to vector<128xf32>
      %92 = vector.shape_cast %91 : vector<128xf32> to vector<1x128xf32>
      %c1_i32_25 = arith.constant 1 : i32
      %93 = vector.broadcast %c1_i32_25 : i32 to vector<8x1xi32>
      %94 = arith.cmpi eq, %51, %93 : vector<8x1xi32>
      %95 = vector.extract_strided_slice %89 {offsets = [1, 0], sizes = [1, 128], strides = [1, 1]} : vector<8x128xf32> to vector<1x128xf32>
      %96 = vector.shape_cast %95 : vector<1x128xf32> to vector<128xf32>
      %97 = vector.shape_cast %96 : vector<128xf32> to vector<1x128xf32>
      %98 = vector.shape_cast %94 : vector<8x1xi1> to vector<8x1xi1>
      %99 = vector.broadcast %98 : vector<8x1xi1> to vector<8x128xi1>
      %100 = vector.shape_cast %97 : vector<1x128xf32> to vector<1x128xf32>
      %101 = vector.broadcast %100 : vector<1x128xf32> to vector<8x128xf32>
      %102 = vector.shape_cast %92 : vector<1x128xf32> to vector<1x128xf32>
      %103 = vector.broadcast %102 : vector<1x128xf32> to vector<8x128xf32>
      %104 = arith.select %99, %101, %103 : vector<8x128xi1>, vector<8x128xf32>
      %c2_i32_26 = arith.constant 2 : i32
      %105 = vector.broadcast %c2_i32_26 : i32 to vector<8x1xi32>
      %106 = arith.cmpi eq, %51, %105 : vector<8x1xi32>
      %107 = vector.extract_strided_slice %89 {offsets = [2, 0], sizes = [1, 128], strides = [1, 1]} : vector<8x128xf32> to vector<1x128xf32>
      %108 = vector.shape_cast %107 : vector<1x128xf32> to vector<128xf32>
      %109 = vector.shape_cast %108 : vector<128xf32> to vector<1x128xf32>
      %110 = vector.shape_cast %106 : vector<8x1xi1> to vector<8x1xi1>
      %111 = vector.broadcast %110 : vector<8x1xi1> to vector<8x128xi1>
      %112 = vector.shape_cast %109 : vector<1x128xf32> to vector<1x128xf32>
      %113 = vector.broadcast %112 : vector<1x128xf32> to vector<8x128xf32>
      %114 = arith.select %111, %113, %104 : vector<8x128xi1>, vector<8x128xf32>
      %c3_i32_27 = arith.constant 3 : i32
      %115 = vector.broadcast %c3_i32_27 : i32 to vector<8x1xi32>
      %116 = arith.cmpi eq, %51, %115 : vector<8x1xi32>
      %117 = vector.extract_strided_slice %89 {offsets = [3, 0], sizes = [1, 128], strides = [1, 1]} : vector<8x128xf32> to vector<1x128xf32>
      %118 = vector.shape_cast %117 : vector<1x128xf32> to vector<128xf32>
      %119 = vector.shape_cast %118 : vector<128xf32> to vector<1x128xf32>
      %120 = vector.shape_cast %116 : vector<8x1xi1> to vector<8x1xi1>
      %121 = vector.broadcast %120 : vector<8x1xi1> to vector<8x128xi1>
      %122 = vector.shape_cast %119 : vector<1x128xf32> to vector<1x128xf32>
      %123 = vector.broadcast %122 : vector<1x128xf32> to vector<8x128xf32>
      %124 = arith.select %121, %123, %114 : vector<8x128xi1>, vector<8x128xf32>
      %125 = arith.addf %88, %124 : vector<8x128xf32>
      %c0_28 = arith.constant 0 : index
      %c0_29 = arith.constant 0 : index
      %126 = vector.load %arg9[%c0_28, %c0_29] : memref<8x128xf32, #tpu.memory_space<vmem>>, vector<8x128xf32>
      tpu.vector_store %arg9[%c0_28, %c0_29], %125 {strides = array<i32>} : memref<8x128xf32, #tpu.memory_space<vmem>>, vector<8x128xf32>,
    } else {
    }
    return
  }
  func.func @transform_0(%arg0: i32, %arg1: i32, %arg2: i32) -> (i32, i32) {
    %c0_i32 = arith.constant 0 : i32
    %c0_i32_0 = arith.constant 0 : i32
    return %arg0, %c0_i32 : i32, i32
  }
  func.func @transform_1(%arg0: i32, %arg1: i32, %arg2: i32) -> (i32, i32) {
    %c0_i32 = arith.constant 0 : i32
    return %arg0, %arg2 : i32, i32
  }
  func.func @transform_2(%arg0: i32, %arg1: i32, %arg2: i32) -> (i32, i32) {
    %c0_i32 = arith.constant 0 : i32
    %c0_i32_0 = arith.constant 0 : i32
    return %c0_i32, %arg2 : i32, i32
  }
  func.func @transform_3(%arg0: i32, %arg1: i32, %arg2: i32) -> (i32, i32) {
    %c0_i32 = arith.constant 0 : i32
    return %arg2, %arg1 : i32, i32
  }
  func.func @transform_4(%arg0: i32, %arg1: i32, %arg2: i32) -> (i32, i32) {
    %c0_i32 = arith.constant 0 : i32
    %c0_i32_0 = arith.constant 0 : i32
    return %c0_i32, %arg1 : i32, i32
  }
  func.func @transform_5(%arg0: i32, %arg1: i32, %arg2: i32) -> (i32, i32) {
    %c0_i32 = arith.constant 0 : i32
    %c0_i32_0 = arith.constant 0 : i32
    return %c0_i32, %arg1 : i32, i32
  }
  func.func @transform_6(%arg0: i32, %arg1: i32, %arg2: i32) -> (i32, i32) {
    %c0_i32 = arith.constant 0 : i32
    return %arg0, %arg1 : i32, i32
  }
}

</mosaic_0001>

<bundles_post_ra>
// kernel: tpu_custom_call.1
= control target key start
LH: loop header
LB: loop body
LE: loop exit
PB: predicated region body
PF: predicated region fallthrough
CT: control target
= control target key end

     0   :  { %11 = vsyncpa [#allocation4], 0  ;;  %s518_s0 = inlined_call_operand.vmem [shape: s32[8,1], index: 0, kind: input, shape index: {}]   ;;  %s519_s1 = inlined_call_operand.vmem [shape: f32[8,128], index: 1, kind: input, shape index: {}]   ;;  %s520_s2 = inlined_call_operand.vmem [shape: f32[8,128], index: 2, kind: input, shape index: {}]   ;;  %s521_s3 = inlined_call_operand.hbm [shape: f32[128,128], index: 3, kind: input, shape index: {}]   ;;  %s522_s4 = inlined_call_operand.vmem [shape: f32[8,128], index: 4, kind: input, shape index: {}]   ;;  %s523_s5 = inlined_call_operand.hbm [shape: f32[8,128], index: 5, kind: input, shape index: {}]   ;;  %s524_s6 = inlined_call_operand.hbm [shape: f32[8,128], index: 6, kind: output, shape index: {}]  }
   0x1   :  { %12 = vsyncpa [#allocation7], 0 }
   0x2   :  { %13 = vsyncpa [#allocation5], 0  ;;  %s426_s21 = smov [#allocation3]   ;;  %s354_s25 = scalar_lea.hbm %s521_s3, 2048 }
   0x3   :  { %s25_s22 = sshll.u32 %s426_s21, 4  ;;  %p355_p0 = scmp.ne.s32.totalorder %s521_s3, %s354_s25  ;;  %s26_s22 = int_to_ptr.vmem [resolvable:$true] %s25_s22 }
   0x4   :  { %p358_p1 = scmp.lt.u32.totalorder %s354_s25, %s521_s3 }
   0x6   :  { %p360_p2 = pnand %p358_p1, %p355_p0 }
   0x8   :  { %363 = shalt.err (!%p360_p2)
}
   0x9   :  { %s364_s30 = scalar_lea.vmem %s26_s22, 2048  ;;  %p369_p4 = scmp.lt.s32.totalorder %s26_s22, %s26_s22 }
   0xa   :  { %p365_p3 = scmp.ne.s32.totalorder %s26_s22, %s364_s30  ;;  %p370_p5 = scmp.lt.s32.totalorder %s364_s30, %s364_s30 }
   0xc   :  { %p371_p6 = por %p370_p5, %p369_p4 }
   0xe   :  { %p372_p7 = pnand %p371_p6, %p365_p3 }
  0x10   :  { %375 = shalt.err (!%p372_p7)
}
  0x11   :  { %s427_s7 = smov 128   ;;  %s428_s8 = smov 8  }
  0x12   :  { %31 = dma.hbm_to_vmem [thread:$0]  %s521_s3, 2048, %s26_s22, [#allocation4], %s427_s7, %s427_s7, %s428_s8  }
  0x13   :  { %s429_s11 = smov [#allocation6]   ;;  %s376_s15 = scalar_lea.hbm %s523_s5, 128 }
  0x14   :  { %s40_s12 = sshll.u32 %s429_s11, 4  ;;  %p377_p8 = scmp.ne.s32.totalorder %s523_s5, %s376_s15  ;;  %s41_s12 = int_to_ptr.vmem [resolvable:$true] %s40_s12 }
  0x15   :  { %p380_p9 = scmp.lt.u32.totalorder %s376_s15, %s523_s5 }
  0x17   :  { %p382_p10 = pnand %p380_p9, %p377_p8 }
  0x19   :  { %385 = shalt.err (!%p382_p10)
}
  0x1a   :  { %s386_s20 = scalar_lea.vmem %s41_s12, 128  ;;  %p391_p12 = scmp.lt.s32.totalorder %s41_s12, %s41_s12 }
  0x1b   :  { %p387_p11 = scmp.ne.s32.totalorder %s41_s12, %s386_s20  ;;  %p392_p13 = scmp.lt.s32.totalorder %s386_s20, %s386_s20 }
  0x1d   :  { %p393_p0 = por %p392_p13, %p391_p12 }
  0x1f   :  { %p394_p1 = pnand %p393_p0, %p387_p11 }
  0x21   :  { %397 = shalt.err (!%p394_p1)
}
  0x22   :  { %43 = dma.hbm_to_vmem [thread:$0]  %s523_s5, 128, %s41_s12, [#allocation7]  }
  0x23   :  { %420 = dma.done.wait [#allocation4], 2048  }
  0x24   :  { %421 = vsyncadd [#allocation4], 4294965248 }
  0x25   :  { %422 = dma.done.wait [#allocation7], 128  }
  0x26   :  { %423 = vsyncadd [#allocation7], 4294967168  ;;  %v430_v0 = vmov 0   ;;  %v431_v1 = vmov 0.0|0.0   ;;  %v57_v2 = vld [vmem:[%s518_s0] sm:$0xff]  ;;  %v97_v3 = vld [vmem:[#allocation3] sm:$0xff]  ;;  %v64_v31 = vlaneseq }
  0x27   :  { %353 = vset.pattern.permute.xlu1 %v430_v0  ;;  %352 = vset.pattern.permute.xlu0 %v430_v0  ;;  %v98_v4 = vld [vmem:[#allocation3 + $0x8] sm:$0xff]  ;;  %vm84_vm0 = vcmp.eq.s32.totalorder %v57_v2, 3  ;;  %vm58_vm1 = vcmp.eq.s32.totalorder %v57_v2, 1  ;;  %vm73_vm2 = vcmp.eq.s32.totalorder %v57_v2, 2  ;;  %v99_v6 = vld [vmem:[#allocation3 + $0x10] sm:$0xff]  ;;  %v100_v7 = vld [vmem:[#allocation3 + $0x18] sm:$0xff] }
  0x28   :  { %319 = vmatprep.subr.bf16.mxu0 %v431_v1  ;;  %v320_v5 = vpack.c.bf16 %v98_v4, %v97_v3  ;;  %v85_v8 = vsel %vm84_vm0, 1, %v430_v0  ;;  %v59_v9 = vsel %vm58_vm1, 1, %v430_v0  ;;  %v74_v10 = vsel %vm73_vm2, 1, %v430_v0  ;;  %v101_v12 = vld [vmem:[#allocation3 + $0x20] sm:$0xff]  ;;  %v102_v13 = vld [vmem:[#allocation3 + $0x28] sm:$0xff]  ;;  %v103_v15 = vld [vmem:[#allocation3 + $0x30] sm:$0xff] }
  0x29   :  { %87 = vperm.xlu1 %353, %v85_v8   ;;  %61 = vperm.xlu0 %352, %v59_v9   ;;  %v323_v11 = vpack.c.bf16 %v100_v7, %v99_v6  ;;  %v326_v14 = vpack.c.bf16 %v102_v13, %v101_v12  ;;  %v104_v16 = vld [vmem:[#allocation3 + $0x38] sm:$0xff]  ;;  %vm432_vm3 = vmmov 0   ;;  %v433_v18 = vmov 0.0   ;;  %v105_v19 = vld [vmem:[#allocation3 + $0x40] sm:$0xff]  ;;  %v106_v20 = vld [vmem:[#allocation3 + $0x48] sm:$0xff]  ;;  %s434_s26 = smov [#allocation8]  }
  0x2a   :  { %321 = vmatpush3.bf16.msra.mxu0 %v320_v5  ;;  %v329_v17 = vpack.c.bf16 %v104_v16, %v103_v15  ;;  %316 = vmatprep.mubr.msk.f32.mxu0 %vm432_vm3, %v433_v18  ;;  %v332_v21 = vpack.c.bf16 %v106_v20, %v105_v19  ;;  %v107_v22 = vld [vmem:[#allocation3 + $0x50] sm:$0xff]  ;;  %v108_v23 = vld [vmem:[#allocation3 + $0x58] sm:$0xff]  ;;  %v109_v25 = vld [vmem:[#allocation3 + $0x60] sm:$0xff]  ;;  %v65_v32 = vshrl.u32 %v64_v31, 7 }
  0x2b   :  { %322 = vmatprep.subr.bf16.mxu0 %v431_v1  ;;  %v335_v24 = vpack.c.bf16 %v108_v23, %v107_v22  ;;  %v110_v26 = vld [vmem:[#allocation3 + $0x68] sm:$0xff]  ;;  %v111_v28 = vld [vmem:[#allocation3 + $0x70] sm:$0xff]  ;;  %v112_v29 = vld [vmem:[#allocation3 + $0x78] sm:$0xff] }
  0x2c   :  { %v338_v27 = vpack.c.bf16 %v110_v26, %v109_v25  ;;  %v341_v30 = vpack.c.bf16 %v112_v29, %v111_v28  ;;  %v66_v33 = vsub.s32 1, %v65_v32  ;;  %v70_v34 = vsub.s32 0, %v65_v32  ;;  %v56_v35 = vld [vmem:[%s520_s2] sm:$0xff]  ;;  %v229_v38 = vld [vmem:[#allocation6] sm:$0xff] }
  0x2d   :  { %194 = vperm.xlu1 %353, %v59_v9   ;;  %76 = vperm.xlu0 %352, %v74_v10   ;;  %v190_v36 = vld [vmem:[%s522_s4] sm:$0xff]  ;;  %v81_v37 = vsub.s32 2, %v65_v32  ;;  %v92_v39 = vsub.s32 3, %v65_v32 }
  0x2e   :  { %324 = vmatpush3.bf16.msra.mxu0 %v323_v11  ;;  %v67_v42 = vrot.slane %v56_v35, %v66_v33  ;;  %v71_v43 = vrot.slane %v56_v35, %v70_v34  ;;  %v200_v44 = vrot.slane %v190_v36, %v66_v33  ;;  %v204_v45 = vrot.slane %v190_v36, %v70_v34  ;;  %v55_v54 = vld [vmem:[%s519_s1] sm:$0xff]  ;;  %s257_s1 = sshll.u32 %s434_s26, 4  ;;  %s258_s1 = int_to_ptr.vmem [resolvable:$true] %s257_s1 }
  0x2f   :  { %325 = vmatprep.subr.bf16.mxu0 %v431_v1  ;;  %v233_v46 = vrot.slane %v229_v38, %v66_v33  ;;  %v237_v47 = vrot.slane %v229_v38, %v70_v34  ;;  %v82_v48 = vrot.slane %v56_v35, %v81_v37  ;;  %v93_v49 = vrot.slane %v56_v35, %v92_v39  ;;  %s398_s27 = scalar_lea.vmem %s258_s1, 128  ;;  %p403_p3 = scmp.lt.s32.totalorder %s258_s1, %s258_s1 }
  0x30   :  { %v215_v53 = vrot.slane %v190_v36, %v81_v37  ;;  %v242_v58 = vrot.slane %v229_v38, %v81_v37  ;;  %v226_v60 = vrot.slane %v190_v36, %v92_v39  ;;  %v247_v61 = vrot.slane %v229_v38, %v92_v39  ;;  %p399_p2 = scmp.ne.s32.totalorder %s258_s1, %s398_s27  ;;  %p404_p4 = scmp.lt.s32.totalorder %s398_s27, %s398_s27 }
  0x31   :  { %220 = vperm.xlu1 %353, %v85_v8   ;;  %209 = vperm.xlu0 %352, %v74_v10  }
  0x32   :  { %327 = vmatpush3.bf16.msra.mxu0 %v326_v14  ;;  %p405_p5 = por %p404_p4, %p403_p3 }
  0x33   :  { %328 = vmatprep.subr.bf16.mxu0 %v431_v1 }
  0x34   :  { %p406_p6 = pnand %p405_p5, %p399_p2 }
  0x36   :  { %330 = vmatpush3.bf16.msra.mxu0 %v329_v17 }
  0x37   :  { %331 = vmatprep.subr.bf16.mxu0 %v431_v1 }
  0x3a   :  { %333 = vmatpush3.bf16.msra.mxu0 %v332_v21 }
  0x3b   :  { %334 = vmatprep.subr.bf16.mxu0 %v431_v1 }
  0x3e   :  { %336 = vmatpush3.bf16.msra.mxu0 %v335_v24 }
  0x3f   :  { %337 = vmatprep.subr.bf16.mxu0 %v431_v1 }
  0x42   :  { %339 = vmatpush3.bf16.msra.mxu0 %v338_v27 }
  0x43   :  { %340 = vmatprep.subr.bf16.mxu0 %v431_v1 }
  0x46   :  { %342 = vmatpush3.bf16.msra.mxu0 %v341_v30 }
  0xa8   :  { %v88_v40 = vpop.permute.xlu1 %87  ;;  %v62_v41 = vpop.permute.xlu0 %61 }
  0xa9   :  { %vm63_vm4 = vcmp.eq.s32.totalorder %v62_v41, 1  ;;  %vm89_vm5 = vcmp.eq.s32.totalorder %v88_v40, 1 }
  0xaa   :  { %v72_v52 = vsel %vm63_vm4, %v67_v42, %v71_v43 }
  0xac   :  { %v195_v50 = vpop.permute.xlu1 %194  ;;  %v77_v51 = vpop.permute.xlu0 %76 }
  0xad   :  { %vm196_vm6 = vcmp.eq.s32.totalorder %v195_v50, 1  ;;  %vm78_vm7 = vcmp.eq.s32.totalorder %v77_v51, 1 }
  0xae   :  { %v205_v55 = vsel %vm196_vm6, %v200_v44, %v204_v45  ;;  %v238_v56 = vsel %vm196_vm6, %v233_v46, %v237_v47  ;;  %v83_v57 = vsel %vm78_vm7, %v82_v48, %v72_v52 }
  0xaf   :  { %v94_v59 = vsel %vm89_vm5, %v93_v49, %v83_v57 }
  0xb0   :  { %v221_v62 = vpop.permute.xlu1 %220  ;;  %v210_v63 = vpop.permute.xlu0 %209  ;;  %v95_v0 = vmul.f32 %v94_v59, %v55_v54 }
  0xb1   :  { %vm222_vm8 = vcmp.eq.s32.totalorder %v221_v62, 1  ;;  %vm211_vm9 = vcmp.eq.s32.totalorder %v210_v63, 1 }
  0xb2   :  { %v216_v1 = vsel %vm211_vm9, %v215_v53, %v205_v55  ;;  %v243_v2 = vsel %vm211_vm9, %v242_v58, %v238_v56  ;;  %317 = vmatmul.mubr.f32.vlgmr.msra.gmra.mrb[0].mxu0 %v95_v0 }
  0xb3   :  { %v227_v3 = vsel %vm222_vm8, %v226_v60, %v216_v1  ;;  %v248_v4 = vsel %vm222_vm8, %v247_v61, %v243_v2 }
 0x185   :  { %v179_v5 = vpop.f32.mrb[0].mxu0 }
 0x186   :  { %v228_v6 = vmul.f32 %v227_v3, %v179_v5  ;;  %v318_v7 = vpop.f32.mrb[1].mxu0 }
 0x188   :  { %v249_v8 = vadd.f32 %v248_v4, %v228_v6 }
 0x18a   :  { %250 = vst [vmem:[#allocation8] sm:$0xff] %v249_v8 }
 0x18b   :  { %409 = shalt.err (!%p406_p6)
}
 0x18c   :  { %s410_s30 = scalar_lea.hbm %s524_s6, 128 }
 0x18d   :  { %p411_p7 = scmp.ne.s32.totalorder %s524_s6, %s410_s30  ;;  %p414_p8 = scmp.lt.u32.totalorder %s410_s30, %s524_s6 }
 0x18f   :  { %p416_p9 = pnand %p414_p8, %p411_p7 }
 0x191   :  { %419 = shalt.err (!%p416_p9)
}
 0x192   :  { %260 = dma.vmem_to_hbm [thread:$0]  %s258_s1, 128, %s524_s6, [#allocation5]  }
 0x193   :  { %424 = dma.done.wait [#allocation5], 128  }
 0x194   :  { %425 = vsyncadd [#allocation5], 4294967168 }
 0x195   :  { %264 = vsyncpa [#allocation4], 1 }
 0x196   :  { %265 = vsyncpa [#allocation7], 1 }
 0x197   :  { %266 = vsyncpa [#allocation5], 1 }

</bundles_post_ra>
